<compile_context>
chip_gen: v7x
topology: tpu7x:2x2x1
jax: 0.10.0
libtpu: 0.0.40
codegen_flags: <defaults>
</compile_context>

<pallas_src>
import functools

import jax
import jax.numpy as jnp
from jax.experimental import pallas as pl
from jax.experimental.pallas import tpu as pltpu


def _snn_decode_kernel(x_ref, w_ref, p_ref,            # inputs
                       volt_ref, v_ref, i_ref,         # outputs
                       zf_ref, zp_ref,                 # VMEM scratch
                       *, chunk, batch, hidden, out_features):
    """One grid step = `chunk` timesteps for the full batch.

    x_ref:    (B, Tc, H)      native batch-major block straight from HBM
    w_ref:    (H, O)
    p_ref:    (3,) SMEM:      [alpha_i, beta_v, gamma_v]
    volt_ref: (Tc, B*O)       lane-dense voltages for this chunk
    v_ref:    (1, B*O)        final membrane voltage (resident state)
    i_ref:    (1, B*O)        final synaptic current (resident state)
    zf_ref:   (B*Tc, O)       batch-major projection staging
    zp_ref:   (Tc, B*O)       time-major, lane-dense projection
    """
    B, Tc, H, O = batch, chunk, hidden, out_features
    BO = B * O

    # Final-state outputs double as the resident LI state accumulators
    # (constant index_map across the time grid); zero them on the first chunk.
    @pl.when(pl.program_id(0) == 0)
    def _():
        v_ref[...] = jnp.zeros_like(v_ref)
        i_ref[...] = jnp.zeros_like(i_ref)

    # ---- Stage 1: one MXU call for the whole chunk, staged to VMEM. -------
    # (B, Tc, H) -> (B*Tc, H) is a free leading-dim collapse (Tc is
    # sublane-aligned); accumulation is f32 regardless of input dtype.
    x2d = x_ref[...].reshape(B * Tc, H)
    zf_ref[...] = jnp.dot(x2d, w_ref[...], preferred_element_type=jnp.float32)

    # ---- Stage 2: repack batch-major rows -> time-major lane-dense slab. ---
    # zp[t, b*O + o] = z[b, t, o]; one lane-dim concat + one aligned (8, B*O)
    # store per 8-timestep group.  All slices are static; zf row offsets are
    # multiples of 8 because Tc % 8 == 0.
    for g in range(Tc // 8):
        r0 = g * 8
        zp_ref[r0:r0 + 8, :] = jnp.concatenate(
            [zf_ref[b * Tc + r0:b * Tc + r0 + 8, :] for b in range(B)],
            axis=-1)

    # ---- Stage 3: LI recurrence on the VPU. --------------------------------
    # Decay factors hoisted once to full-width rows (no re-broadcast per step).
    alpha_i = jnp.full((1, BO), p_ref[0], jnp.float32)  # 1 - dt*clamp(tau_syn)
    beta_v = jnp.full((1, BO), p_ref[1], jnp.float32)   # 1 - dt*clamp(tau_mem)
    gamma_v = jnp.full((1, BO), p_ref[2], jnp.float32)  # dt*clamp(tau_mem)

    v = v_ref[...]
    i = i_ref[...]
    for t in range(Tc):                       # static unroll; z comes from
        i_jump = i + zp_ref[t:t + 1, :]       # VMEM so live ranges stay tiny
        v = beta_v * v + gamma_v * i_jump     # == v + dt*tau_mem*(-v + i_jump)
        i = alpha_i * i_jump                  # == i_jump - dt*tau_syn*i_jump
        volt_ref[t:t + 1, :] = v
    v_ref[...] = v
    i_ref[...] = i


def _pick_time_chunk(S, B, align, max_rows=1024, max_steps=128):
    """Largest divisor Tc of S (multiple of `align`) keeping B*Tc matmul rows
    and the in-kernel unroll bounded."""
    best = None
    for tc in range(align, S + 1, align):
        if S % tc == 0 and B * tc <= max_rows and tc <= max_steps:
            best = tc
    if best is None:
        cands = [tc for tc in range(align, S + 1, align) if S % tc == 0]
        if not cands:
            raise ValueError(
                f"seq_length={S} needs a divisor that is a multiple of {align}"
                " (TODO(synk): pad the sequence for ragged lengths)")
        best = cands[0]
    return best


@functools.partial(jax.jit,
                   static_argnames=("dt", "time_chunk", "use_bf16_matmul"))
def snn_decode(x_bsh, w_ho, tau_syn_out, tau_mem_out, dt=1e-3,
               time_chunk=None, use_bf16_matmul=True):
    """x_bsh: (batch, seq, hidden) as in the module; w_ho: (hidden, out).

    Returns (voltages (seq, batch, out), v_final (batch, out),
             i_final (batch, out)).
    """
    B, S, H = x_bsh.shape
    O = w_ho.shape[1]
    BO = B * O

    matmul_dtype = jnp.bfloat16 if use_bf16_matmul else jnp.float32
    align = 16 if use_bf16_matmul else 8   # keep (B,Tc,H)->(B*Tc,H) tile-clean

    Tc = (_pick_time_chunk(S, B, align) if time_chunk is None
          else int(time_chunk))
    if S % Tc != 0:
        raise ValueError(f"time_chunk={Tc} must divide seq_length={S}")
    if Tc % align != 0:
        raise ValueError(f"time_chunk={Tc} must be a multiple of {align}")
    n_chunks = S // Tc

    x_in = x_bsh.astype(matmul_dtype)          # native (B, S, H) layout, no
    w_in = w_ho.astype(matmul_dtype)           # wrapper transpose / copy

    # Precomputed decay factors (clamp(0,1) like the module), passed via SMEM.
    tau_syn = jnp.clip(jnp.asarray(tau_syn_out, jnp.float32), 0.0, 1.0)
    tau_mem = jnp.clip(jnp.asarray(tau_mem_out, jnp.float32), 0.0, 1.0)
    params = jnp.stack([1.0 - dt * tau_syn,            # alpha_i
                        1.0 - dt * tau_mem,            # beta_v
                        dt * tau_mem]).astype(jnp.float32)  # gamma_v

    out_shapes = (
        jax.ShapeDtypeStruct((S, BO), jnp.float32),    # voltages, lane-dense
        jax.ShapeDtypeStruct((1, BO), jnp.float32),    # final state v
        jax.ShapeDtypeStruct((1, BO), jnp.float32),    # final state i
    )

    grid_spec = pltpu.PrefetchScalarGridSpec(
        num_scalar_prefetch=0,
        grid=(n_chunks,),
        in_specs=[
            pl.BlockSpec((B, Tc, H), lambda c: (0, c, 0)),       # x chunk
            pl.BlockSpec((H, O), lambda c: (0, 0)),              # weight
            pl.BlockSpec(memory_space=pltpu.MemorySpace.SMEM),   # decay scalars
        ],
        out_specs=(
            pl.BlockSpec((Tc, BO), lambda c: (c, 0)),            # voltages
            pl.BlockSpec((1, BO), lambda c: (0, 0)),             # v final
            pl.BlockSpec((1, BO), lambda c: (0, 0)),             # i final
        ),
        scratch_shapes=[
            pltpu.VMEM((B * Tc, O), jnp.float32),   # batch-major projection
            pltpu.VMEM((Tc, BO), jnp.float32),      # time-major lane-dense z
        ],
    )

    # VMEM budget: estimate with lane padding, cap at 0.75 * physical VMEM
    # (v7x has 64 MiB/TC vs 128 MiB on v5e/v6e).
    item = jnp.dtype(matmul_dtype).itemsize
    lane = 128
    hp = -(-H // lane) * lane
    op = -(-O // lane) * lane
    bop = -(-BO // lane) * lane
    vmem_est = (2 * B * Tc * hp * item           # x block (double-buffered)
                + 2 * (-(-H // 8) * 8) * op * item   # weight
                + 2 * Tc * bop * 4               # voltage block
                + 4 * 8 * bop * 4                # v/i resident state
                + B * Tc * op * 4                # zf scratch
                + Tc * bop * 4)                  # zp scratch
    try:
        vmem_cap = getattr(pltpu.get_tpu_info(), "vmem_capacity_bytes",
                           128 * 1024 * 1024)
    except Exception:
        vmem_cap = 128 * 1024 * 1024
    vmem_limit = int(min(0.75 * vmem_cap,
                         max(32 * 1024 * 1024, 2 * vmem_est)))

    cost = pl.CostEstimate(
        flops=2 * S * B * H * O + 6 * S * B * O,
        transcendentals=0,
        bytes_accessed=(S * B * H * item + H * O * item
                        + S * BO * 4 + 2 * BO * 4 + 12),
    )

    kernel = functools.partial(_snn_decode_kernel, chunk=Tc, batch=B,
                               hidden=H, out_features=O)

    volt2d, v_f, i_f = pl.pallas_call(
        kernel,
        out_shape=out_shapes,
        grid_spec=grid_spec,
        compiler_params=pltpu.CompilerParams(
            dimension_semantics=("arbitrary",),   # time recurrence is carried
            vmem_limit_bytes=vmem_limit,
        ),
        cost_estimate=cost,
    )(x_in, w_in, params)

    # Free reshapes: (S, B*O) -> (S, B, O), (1, B*O) -> (B, O).
    return volt2d.reshape(S, B, O), v_f.reshape(B, O), i_f.reshape(B, O)


def snn_decode_reference(x_bsh, w_ho, tau_syn_out, tau_mem_out, dt=1e-3):
    """Pure-JAX reference (lax.scan) of the module's recurrence, f32."""
    x_tbh = jnp.transpose(x_bsh, (1, 0, 2))
    dt_tau_syn = dt * jnp.clip(jnp.asarray(tau_syn_out, jnp.float32), 0.0, 1.0)
    dt_tau_mem = dt * jnp.clip(jnp.asarray(tau_mem_out, jnp.float32), 0.0, 1.0)
    B = x_bsh.shape[0]
    O = w_ho.shape[1]

    def step(carry, x_t):
        v, i = carry
        z = jnp.dot(x_t, w_ho, precision=jax.lax.Precision.HIGHEST)
        i_jump = i + z
        v_new = v + dt_tau_mem * (-v + i_jump)
        i_new = i_jump - dt_tau_syn * i_jump
        return (v_new, i_new), v_new

    init = (jnp.zeros((B, O), jnp.float32), jnp.zeros((B, O), jnp.float32))
    (v_f, i_f), volts = jax.lax.scan(step, init, x_tbh)
    return volts, v_f, i_f


if __name__ == "__main__":
    key = jax.random.PRNGKey(0)
    k_x, k_w = jax.random.split(key)

    batch, seq, hidden, out_features = 8, 64, 64, 16   # B*O = 128 (lane-dense)
    dt = 1e-3
    tau_syn_out = jnp.float32(0.5)   # module defaults (learnable params)
    tau_mem_out = jnp.float32(0.5)

    # Module input: (batch, seq, hidden_features), matching x.size() in forward.
    x = jax.random.normal(k_x, (batch, seq, hidden), dtype=jnp.float32)

    # Deterministic Linear(hidden, out, bias=False) weight, PyTorch-style
    # uniform(-1/sqrt(hidden), 1/sqrt(hidden)); stored (out, hidden) like torch.
    bound = 1.0 / (hidden ** 0.5)
    w_oh = jax.random.uniform(k_w, (out_features, hidden), dtype=jnp.float32,
                              minval=-bound, maxval=bound)
    w_ho = w_oh.T   # glue: kernel wants (hidden, out) for x @ W layout

    volts_r, v_r, i_r = snn_decode_reference(x, w_ho, tau_syn_out,
                                             tau_mem_out, dt=dt)

    # 1) Bit-faithful f32 run, 4 time chunks (exercises cross-chunk state carry).
    volts, v_f, i_f = snn_decode(x, w_ho, tau_syn_out, tau_mem_out, dt=dt,
                                 time_chunk=16, use_bf16_matmul=False)
    jax.block_until_ready((volts, v_f, i_f))
    assert volts.shape == (seq, batch, out_features)
    assert v_f.shape == (batch, out_features)
    assert i_f.shape == (batch, out_features)
    assert jnp.allclose(volts, volts_r, atol=2e-5, rtol=2e-4)
    assert jnp.allclose(v_f, v_r, atol=2e-5, rtol=2e-4)
    assert jnp.allclose(i_f, i_r, atol=2e-5, rtol=2e-4)

    # 2) Default fast path: bf16 matmul inputs (f32 accumulation / f32 state),
    #    auto-picked single chunk; checked against the reference loosely.
    volts_b, v_b, i_b = snn_decode(x, w_ho, tau_syn_out, tau_mem_out, dt=dt)
    jax.block_until_ready((volts_b, v_b, i_b))
    assert jnp.allclose(volts_b, volts_r, atol=2e-2, rtol=1e-1)
    assert jnp.allclose(v_b, v_r, atol=2e-2, rtol=1e-1)
    assert jnp.allclose(i_b, i_r, atol=1e-1, rtol=1e-1)

    # TODO(synk): `record=True` hidden-state recording and `neuron_mask`
    # zeroing are not exercised (module defaults are False/None); the mask
    # would be a jnp.where on the x block before the matmul if needed.
    print("KERNEL_OK")
</pallas_src>

<mosaic_0001>
module attributes {stable_mosaic.version = 11 : i64} {
  func.func @_snn_decode_kernel(%arg0: i32, %arg1: memref<8x16x64xf32, #tpu.memory_space<vmem>>, %arg2: memref<64x16xf32, #tpu.memory_space<vmem>>, %arg3: memref<3xf32, #tpu.memory_space<smem>>, %arg4: memref<16x128xf32, #tpu.memory_space<vmem>>, %arg5: memref<1x128xf32, #tpu.memory_space<vmem>>, %arg6: memref<1x128xf32, #tpu.memory_space<vmem>>, %arg7: memref<128x16xf32, #tpu.memory_space<vmem>>, %arg8: memref<16x128xf32, #tpu.memory_space<vmem>>) attributes {dimension_semantics = [#tpu.dimension_semantics<arbitrary>], iteration_bounds = array<i64: 4>, scalar_prefetch = 0 : i64, scratch_operands = 2 : i64, tpu.core_type = #tpu.core_type<tc>, window_params = [{transform_indices = @transform_0, window_bounds = array<i64: 8, 16, 64>}, {pipeline_mode = #tpu.pipeline_mode<synchronous>, transform_indices = @transform_1, window_bounds = array<i64: 64, 16>}, {transform_indices = @transform_2, window_bounds = array<i64: 3>}, {transform_indices = @transform_3, window_bounds = array<i64: 16, 128>}, {pipeline_mode = #tpu.pipeline_mode<synchronous>, transform_indices = @transform_4, window_bounds = array<i64: 1, 128>}, {pipeline_mode = #tpu.pipeline_mode<synchronous>, transform_indices = @transform_5, window_bounds = array<i64: 1, 128>}]} {
    %c0_i32 = arith.constant 0 : i32
    %0 = arith.cmpi eq, %arg0, %c0_i32 : i32
    %1 = arith.extui %0 : i1 to i32
    %c0_i32_0 = arith.constant 0 : i32
    %2 = arith.cmpi ne, %1, %c0_i32_0 : i32
    scf.if %2 {
      %cst_89 = arith.constant 0.000000e+00 : f32
      %150 = vector.broadcast %cst_89 : f32 to vector<1x128xf32>
      %c0_90 = arith.constant 0 : index
      %c0_91 = arith.constant 0 : index
      %151 = vector.load %arg5[%c0_90, %c0_91] : memref<1x128xf32, #tpu.memory_space<vmem>>, vector<1x128xf32>
      tpu.vector_store %arg5[%c0_90, %c0_91], %150 {strides = array<i32>} : memref<1x128xf32, #tpu.memory_space<vmem>>, vector<1x128xf32>,
      %cst_92 = arith.constant 0.000000e+00 : f32
      %152 = vector.broadcast %cst_92 : f32 to vector<1x128xf32>
      %c0_93 = arith.constant 0 : index
      %c0_94 = arith.constant 0 : index
      %153 = vector.load %arg6[%c0_93, %c0_94] : memref<1x128xf32, #tpu.memory_space<vmem>>, vector<1x128xf32>
      tpu.vector_store %arg6[%c0_93, %c0_94], %152 {strides = array<i32>} : memref<1x128xf32, #tpu.memory_space<vmem>>, vector<1x128xf32>,
    } else {
    }
    %c0 = arith.constant 0 : index
    %c0_1 = arith.constant 0 : index
    %c0_2 = arith.constant 0 : index
    %3 = vector.load %arg1[%c0, %c0_1, %c0_2] : memref<8x16x64xf32, #tpu.memory_space<vmem>>, vector<8x16x64xf32>
    %4 = vector.shape_cast %3 : vector<8x16x64xf32> to vector<128x64xf32>
    %c0_3 = arith.constant 0 : index
    %c0_4 = arith.constant 0 : index
    %5 = vector.load %arg2[%c0_3, %c0_4] : memref<64x16xf32, #tpu.memory_space<vmem>>, vector<64x16xf32>
    %cst = arith.constant dense<0.000000e+00> : vector<128x16xf32>
    %6 = tpu.matmul %4, %5, %cst {dimension_numbers = #tpu.dot_dimension_numbers<[1], [0], [0], [1], [0, 0, 1, 1], [], []>} : vector<128x64xf32>, vector<64x16xf32>, vector<128x16xf32> -> vector<128x16xf32>
    %c0_5 = arith.constant 0 : index
    %c0_6 = arith.constant 0 : index
    %7 = vector.load %arg7[%c0_5, %c0_6] : memref<128x16xf32, #tpu.memory_space<vmem>>, vector<128x16xf32>
    tpu.vector_store %arg7[%c0_5, %c0_6], %6 {strides = array<i32>} : memref<128x16xf32, #tpu.memory_space<vmem>>, vector<128x16xf32>,
    %c0_7 = arith.constant 0 : index
    %c0_8 = arith.constant 0 : index
    %8 = vector.load %arg7[%c0_7, %c0_8] : memref<128x16xf32, #tpu.memory_space<vmem>>, vector<8x16xf32>
    %c16 = arith.constant 16 : index
    %c0_9 = arith.constant 0 : index
    %9 = vector.load %arg7[%c16, %c0_9] : memref<128x16xf32, #tpu.memory_space<vmem>>, vector<8x16xf32>
    %c32 = arith.constant 32 : index
    %c0_10 = arith.constant 0 : index
    %10 = vector.load %arg7[%c32, %c0_10] : memref<128x16xf32, #tpu.memory_space<vmem>>, vector<8x16xf32>
    %c48 = arith.constant 48 : index
    %c0_11 = arith.constant 0 : index
    %11 = vector.load %arg7[%c48, %c0_11] : memref<128x16xf32, #tpu.memory_space<vmem>>, vector<8x16xf32>
    %c64 = arith.constant 64 : index
    %c0_12 = arith.constant 0 : index
    %12 = vector.load %arg7[%c64, %c0_12] : memref<128x16xf32, #tpu.memory_space<vmem>>, vector<8x16xf32>
    %c80 = arith.constant 80 : index
    %c0_13 = arith.constant 0 : index
    %13 = vector.load %arg7[%c80, %c0_13] : memref<128x16xf32, #tpu.memory_space<vmem>>, vector<8x16xf32>
    %c96 = arith.constant 96 : index
    %c0_14 = arith.constant 0 : index
    %14 = vector.load %arg7[%c96, %c0_14] : memref<128x16xf32, #tpu.memory_space<vmem>>, vector<8x16xf32>
    %c112 = arith.constant 112 : index
    %c0_15 = arith.constant 0 : index
    %15 = vector.load %arg7[%c112, %c0_15] : memref<128x16xf32, #tpu.memory_space<vmem>>, vector<8x16xf32>
    %16 = tpu.concatenate %8, %9, %10, %11, %12, %13, %14, %15 in 1 : vector<8x16xf32>, vector<8x16xf32>, vector<8x16xf32>, vector<8x16xf32>, vector<8x16xf32>, vector<8x16xf32>, vector<8x16xf32>, vector<8x16xf32> -> vector<8x128xf32>
    %c0_16 = arith.constant 0 : index
    %c0_17 = arith.constant 0 : index
    %17 = vector.load %arg8[%c0_16, %c0_17] : memref<16x128xf32, #tpu.memory_space<vmem>>, vector<8x128xf32>
    tpu.vector_store %arg8[%c0_16, %c0_17], %16 {strides = array<i32>} : memref<16x128xf32, #tpu.memory_space<vmem>>, vector<8x128xf32>,
    %c8 = arith.constant 8 : index
    %c0_18 = arith.constant 0 : index
    %18 = vector.load %arg7[%c8, %c0_18] : memref<128x16xf32, #tpu.memory_space<vmem>>, vector<8x16xf32>
    %c24 = arith.constant 24 : index
    %c0_19 = arith.constant 0 : index
    %19 = vector.load %arg7[%c24, %c0_19] : memref<128x16xf32, #tpu.memory_space<vmem>>, vector<8x16xf32>
    %c40 = arith.constant 40 : index
    %c0_20 = arith.constant 0 : index
    %20 = vector.load %arg7[%c40, %c0_20] : memref<128x16xf32, #tpu.memory_space<vmem>>, vector<8x16xf32>
    %c56 = arith.constant 56 : index
    %c0_21 = arith.constant 0 : index
    %21 = vector.load %arg7[%c56, %c0_21] : memref<128x16xf32, #tpu.memory_space<vmem>>, vector<8x16xf32>
    %c72 = arith.constant 72 : index
    %c0_22 = arith.constant 0 : index
    %22 = vector.load %arg7[%c72, %c0_22] : memref<128x16xf32, #tpu.memory_space<vmem>>, vector<8x16xf32>
    %c88 = arith.constant 88 : index
    %c0_23 = arith.constant 0 : index
    %23 = vector.load %arg7[%c88, %c0_23] : memref<128x16xf32, #tpu.memory_space<vmem>>, vector<8x16xf32>
    %c104 = arith.constant 104 : index
    %c0_24 = arith.constant 0 : index
    %24 = vector.load %arg7[%c104, %c0_24] : memref<128x16xf32, #tpu.memory_space<vmem>>, vector<8x16xf32>
    %c120 = arith.constant 120 : index
    %c0_25 = arith.constant 0 : index
    %25 = vector.load %arg7[%c120, %c0_25] : memref<128x16xf32, #tpu.memory_space<vmem>>, vector<8x16xf32>
    %26 = tpu.concatenate %18, %19, %20, %21, %22, %23, %24, %25 in 1 : vector<8x16xf32>, vector<8x16xf32>, vector<8x16xf32>, vector<8x16xf32>, vector<8x16xf32>, vector<8x16xf32>, vector<8x16xf32>, vector<8x16xf32> -> vector<8x128xf32>
    %c8_26 = arith.constant 8 : index
    %c0_27 = arith.constant 0 : index
    %27 = vector.load %arg8[%c8_26, %c0_27] : memref<16x128xf32, #tpu.memory_space<vmem>>, vector<8x128xf32>
    tpu.vector_store %arg8[%c8_26, %c0_27], %26 {strides = array<i32>} : memref<16x128xf32, #tpu.memory_space<vmem>>, vector<8x128xf32>,
    %c0_28 = arith.constant 0 : index
    %28 = memref.load %arg3[%c0_28] : memref<3xf32, #tpu.memory_space<smem>>
    %29 = vector.broadcast %28 : f32 to vector<1x128xf32>
    %c1 = arith.constant 1 : index
    %30 = memref.load %arg3[%c1] : memref<3xf32, #tpu.memory_space<smem>>
    %31 = vector.broadcast %30 : f32 to vector<1x128xf32>
    %c2 = arith.constant 2 : index
    %32 = memref.load %arg3[%c2] : memref<3xf32, #tpu.memory_space<smem>>
    %33 = vector.broadcast %32 : f32 to vector<1x128xf32>
    %c0_29 = arith.constant 0 : index
    %c0_30 = arith.constant 0 : index
    %34 = vector.load %arg5[%c0_29, %c0_30] : memref<1x128xf32, #tpu.memory_space<vmem>>, vector<1x128xf32>
    %c0_31 = arith.constant 0 : index
    %c0_32 = arith.constant 0 : index
    %35 = vector.load %arg6[%c0_31, %c0_32] : memref<1x128xf32, #tpu.memory_space<vmem>>, vector<1x128xf32>
    %c0_33 = arith.constant 0 : index
    %c0_34 = arith.constant 0 : index
    %36 = vector.load %arg8[%c0_33, %c0_34] : memref<16x128xf32, #tpu.memory_space<vmem>>, vector<1x128xf32>
    %37 = arith.addf %35, %36 : vector<1x128xf32>
    %38 = arith.mulf %31, %34 : vector<1x128xf32>
    %39 = arith.mulf %33, %37 : vector<1x128xf32>
    %40 = arith.addf %38, %39 : vector<1x128xf32>
    %41 = arith.mulf %29, %37 : vector<1x128xf32>
    %c0_35 = arith.constant 0 : index
    %c0_36 = arith.constant 0 : index
    %42 = vector.load %arg4[%c0_35, %c0_36] : memref<16x128xf32, #tpu.memory_space<vmem>>, vector<1x128xf32>
    tpu.vector_store %arg4[%c0_35, %c0_36], %40 {strides = array<i32>} : memref<16x128xf32, #tpu.memory_space<vmem>>, vector<1x128xf32>,
    %c1_37 = arith.constant 1 : index
    %c0_38 = arith.constant 0 : index
    %43 = vector.load %arg8[%c1_37, %c0_38] : memref<16x128xf32, #tpu.memory_space<vmem>>, vector<1x128xf32>
    %44 = arith.addf %41, %43 : vector<1x128xf32>
    %45 = arith.mulf %31, %40 : vector<1x128xf32>
    %46 = arith.mulf %33, %44 : vector<1x128xf32>
    %47 = arith.addf %45, %46 : vector<1x128xf32>
    %48 = arith.mulf %29, %44 : vector<1x128xf32>
    %c1_39 = arith.constant 1 : index
    %c0_40 = arith.constant 0 : index
    %49 = vector.load %arg4[%c1_39, %c0_40] : memref<16x128xf32, #tpu.memory_space<vmem>>, vector<1x128xf32>
    tpu.vector_store %arg4[%c1_39, %c0_40], %47 {strides = array<i32>} : memref<16x128xf32, #tpu.memory_space<vmem>>, vector<1x128xf32>,
    %c2_41 = arith.constant 2 : index
    %c0_42 = arith.constant 0 : index
    %50 = vector.load %arg8[%c2_41, %c0_42] : memref<16x128xf32, #tpu.memory_space<vmem>>, vector<1x128xf32>
    %51 = arith.addf %48, %50 : vector<1x128xf32>
    %52 = arith.mulf %31, %47 : vector<1x128xf32>
    %53 = arith.mulf %33, %51 : vector<1x128xf32>
    %54 = arith.addf %52, %53 : vector<1x128xf32>
    %55 = arith.mulf %29, %51 : vector<1x128xf32>
    %c2_43 = arith.constant 2 : index
    %c0_44 = arith.constant 0 : index
    %56 = vector.load %arg4[%c2_43, %c0_44] : memref<16x128xf32, #tpu.memory_space<vmem>>, vector<1x128xf32>
    tpu.vector_store %arg4[%c2_43, %c0_44], %54 {strides = array<i32>} : memref<16x128xf32, #tpu.memory_space<vmem>>, vector<1x128xf32>,
    %c3 = arith.constant 3 : index
    %c0_45 = arith.constant 0 : index
    %57 = vector.load %arg8[%c3, %c0_45] : memref<16x128xf32, #tpu.memory_space<vmem>>, vector<1x128xf32>
    %58 = arith.addf %55, %57 : vector<1x128xf32>
    %59 = arith.mulf %31, %54 : vector<1x128xf32>
    %60 = arith.mulf %33, %58 : vector<1x128xf32>
    %61 = arith.addf %59, %60 : vector<1x128xf32>
    %62 = arith.mulf %29, %58 : vector<1x128xf32>
    %c3_46 = arith.constant 3 : index
    %c0_47 = arith.constant 0 : index
    %63 = vector.load %arg4[%c3_46, %c0_47] : memref<16x128xf32, #tpu.memory_space<vmem>>, vector<1x128xf32>
    tpu.vector_store %arg4[%c3_46, %c0_47], %61 {strides = array<i32>} : memref<16x128xf32, #tpu.memory_space<vmem>>, vector<1x128xf32>,
    %c4 = arith.constant 4 : index
    %c0_48 = arith.constant 0 : index
    %64 = vector.load %arg8[%c4, %c0_48] : memref<16x128xf32, #tpu.memory_space<vmem>>, vector<1x128xf32>
    %65 = arith.addf %62, %64 : vector<1x128xf32>
    %66 = arith.mulf %31, %61 : vector<1x128xf32>
    %67 = arith.mulf %33, %65 : vector<1x128xf32>
    %68 = arith.addf %66, %67 : vector<1x128xf32>
    %69 = arith.mulf %29, %65 : vector<1x128xf32>
    %c4_49 = arith.constant 4 : index
    %c0_50 = arith.constant 0 : index
    %70 = vector.load %arg4[%c4_49, %c0_50] : memref<16x128xf32, #tpu.memory_space<vmem>>, vector<1x128xf32>
    tpu.vector_store %arg4[%c4_49, %c0_50], %68 {strides = array<i32>} : memref<16x128xf32, #tpu.memory_space<vmem>>, vector<1x128xf32>,
    %c5 = arith.constant 5 : index
    %c0_51 = arith.constant 0 : index
    %71 = vector.load %arg8[%c5, %c0_51] : memref<16x128xf32, #tpu.memory_space<vmem>>, vector<1x128xf32>
    %72 = arith.addf %69, %71 : vector<1x128xf32>
    %73 = arith.mulf %31, %68 : vector<1x128xf32>
    %74 = arith.mulf %33, %72 : vector<1x128xf32>
    %75 = arith.addf %73, %74 : vector<1x128xf32>
    %76 = arith.mulf %29, %72 : vector<1x128xf32>
    %c5_52 = arith.constant 5 : index
    %c0_53 = arith.constant 0 : index
    %77 = vector.load %arg4[%c5_52, %c0_53] : memref<16x128xf32, #tpu.memory_space<vmem>>, vector<1x128xf32>
    tpu.vector_store %arg4[%c5_52, %c0_53], %75 {strides = array<i32>} : memref<16x128xf32, #tpu.memory_space<vmem>>, vector<1x128xf32>,
    %c6 = arith.constant 6 : index
    %c0_54 = arith.constant 0 : index
    %78 = vector.load %arg8[%c6, %c0_54] : memref<16x128xf32, #tpu.memory_space<vmem>>, vector<1x128xf32>
    %79 = arith.addf %76, %78 : vector<1x128xf32>
    %80 = arith.mulf %31, %75 : vector<1x128xf32>
    %81 = arith.mulf %33, %79 : vector<1x128xf32>
    %82 = arith.addf %80, %81 : vector<1x128xf32>
    %83 = arith.mulf %29, %79 : vector<1x128xf32>
    %c6_55 = arith.constant 6 : index
    %c0_56 = arith.constant 0 : index
    %84 = vector.load %arg4[%c6_55, %c0_56] : memref<16x128xf32, #tpu.memory_space<vmem>>, vector<1x128xf32>
    tpu.vector_store %arg4[%c6_55, %c0_56], %82 {strides = array<i32>} : memref<16x128xf32, #tpu.memory_space<vmem>>, vector<1x128xf32>,
    %c7 = arith.constant 7 : index
    %c0_57 = arith.constant 0 : index
    %85 = vector.load %arg8[%c7, %c0_57] : memref<16x128xf32, #tpu.memory_space<vmem>>, vector<1x128xf32>
    %86 = arith.addf %83, %85 : vector<1x128xf32>
    %87 = arith.mulf %31, %82 : vector<1x128xf32>
    %88 = arith.mulf %33, %86 : vector<1x128xf32>
    %89 = arith.addf %87, %88 : vector<1x128xf32>
    %90 = arith.mulf %29, %86 : vector<1x128xf32>
    %c7_58 = arith.constant 7 : index
    %c0_59 = arith.constant 0 : index
    %91 = vector.load %arg4[%c7_58, %c0_59] : memref<16x128xf32, #tpu.memory_space<vmem>>, vector<1x128xf32>
    tpu.vector_store %arg4[%c7_58, %c0_59], %89 {strides = array<i32>} : memref<16x128xf32, #tpu.memory_space<vmem>>, vector<1x128xf32>,
    %c8_60 = arith.constant 8 : index
    %c0_61 = arith.constant 0 : index
    %92 = vector.load %arg8[%c8_60, %c0_61] : memref<16x128xf32, #tpu.memory_space<vmem>>, vector<1x128xf32>
    %93 = arith.addf %90, %92 : vector<1x128xf32>
    %94 = arith.mulf %31, %89 : vector<1x128xf32>
    %95 = arith.mulf %33, %93 : vector<1x128xf32>
    %96 = arith.addf %94, %95 : vector<1x128xf32>
    %97 = arith.mulf %29, %93 : vector<1x128xf32>
    %c8_62 = arith.constant 8 : index
    %c0_63 = arith.constant 0 : index
    %98 = vector.load %arg4[%c8_62, %c0_63] : memref<16x128xf32, #tpu.memory_space<vmem>>, vector<1x128xf32>
    tpu.vector_store %arg4[%c8_62, %c0_63], %96 {strides = array<i32>} : memref<16x128xf32, #tpu.memory_space<vmem>>, vector<1x128xf32>,
    %c9 = arith.constant 9 : index
    %c0_64 = arith.constant 0 : index
    %99 = vector.load %arg8[%c9, %c0_64] : memref<16x128xf32, #tpu.memory_space<vmem>>, vector<1x128xf32>
    %100 = arith.addf %97, %99 : vector<1x128xf32>
    %101 = arith.mulf %31, %96 : vector<1x128xf32>
    %102 = arith.mulf %33, %100 : vector<1x128xf32>
    %103 = arith.addf %101, %102 : vector<1x128xf32>
    %104 = arith.mulf %29, %100 : vector<1x128xf32>
    %c9_65 = arith.constant 9 : index
    %c0_66 = arith.constant 0 : index
    %105 = vector.load %arg4[%c9_65, %c0_66] : memref<16x128xf32, #tpu.memory_space<vmem>>, vector<1x128xf32>
    tpu.vector_store %arg4[%c9_65, %c0_66], %103 {strides = array<i32>} : memref<16x128xf32, #tpu.memory_space<vmem>>, vector<1x128xf32>,
    %c10 = arith.constant 10 : index
    %c0_67 = arith.constant 0 : index
    %106 = vector.load %arg8[%c10, %c0_67] : memref<16x128xf32, #tpu.memory_space<vmem>>, vector<1x128xf32>
    %107 = arith.addf %104, %106 : vector<1x128xf32>
    %108 = arith.mulf %31, %103 : vector<1x128xf32>
    %109 = arith.mulf %33, %107 : vector<1x128xf32>
    %110 = arith.addf %108, %109 : vector<1x128xf32>
    %111 = arith.mulf %29, %107 : vector<1x128xf32>
    %c10_68 = arith.constant 10 : index
    %c0_69 = arith.constant 0 : index
    %112 = vector.load %arg4[%c10_68, %c0_69] : memref<16x128xf32, #tpu.memory_space<vmem>>, vector<1x128xf32>
    tpu.vector_store %arg4[%c10_68, %c0_69], %110 {strides = array<i32>} : memref<16x128xf32, #tpu.memory_space<vmem>>, vector<1x128xf32>,
    %c11 = arith.constant 11 : index
    %c0_70 = arith.constant 0 : index
    %113 = vector.load %arg8[%c11, %c0_70] : memref<16x128xf32, #tpu.memory_space<vmem>>, vector<1x128xf32>
    %114 = arith.addf %111, %113 : vector<1x128xf32>
    %115 = arith.mulf %31, %110 : vector<1x128xf32>
    %116 = arith.mulf %33, %114 : vector<1x128xf32>
    %117 = arith.addf %115, %116 : vector<1x128xf32>
    %118 = arith.mulf %29, %114 : vector<1x128xf32>
    %c11_71 = arith.constant 11 : index
    %c0_72 = arith.constant 0 : index
    %119 = vector.load %arg4[%c11_71, %c0_72] : memref<16x128xf32, #tpu.memory_space<vmem>>, vector<1x128xf32>
    tpu.vector_store %arg4[%c11_71, %c0_72], %117 {strides = array<i32>} : memref<16x128xf32, #tpu.memory_space<vmem>>, vector<1x128xf32>,
    %c12 = arith.constant 12 : index
    %c0_73 = arith.constant 0 : index
    %120 = vector.load %arg8[%c12, %c0_73] : memref<16x128xf32, #tpu.memory_space<vmem>>, vector<1x128xf32>
    %121 = arith.addf %118, %120 : vector<1x128xf32>
    %122 = arith.mulf %31, %117 : vector<1x128xf32>
    %123 = arith.mulf %33, %121 : vector<1x128xf32>
    %124 = arith.addf %122, %123 : vector<1x128xf32>
    %125 = arith.mulf %29, %121 : vector<1x128xf32>
    %c12_74 = arith.constant 12 : index
    %c0_75 = arith.constant 0 : index
    %126 = vector.load %arg4[%c12_74, %c0_75] : memref<16x128xf32, #tpu.memory_space<vmem>>, vector<1x128xf32>
    tpu.vector_store %arg4[%c12_74, %c0_75], %124 {strides = array<i32>} : memref<16x128xf32, #tpu.memory_space<vmem>>, vector<1x128xf32>,
    %c13 = arith.constant 13 : index
    %c0_76 = arith.constant 0 : index
    %127 = vector.load %arg8[%c13, %c0_76] : memref<16x128xf32, #tpu.memory_space<vmem>>, vector<1x128xf32>
    %128 = arith.addf %125, %127 : vector<1x128xf32>
    %129 = arith.mulf %31, %124 : vector<1x128xf32>
    %130 = arith.mulf %33, %128 : vector<1x128xf32>
    %131 = arith.addf %129, %130 : vector<1x128xf32>
    %132 = arith.mulf %29, %128 : vector<1x128xf32>
    %c13_77 = arith.constant 13 : index
    %c0_78 = arith.constant 0 : index
    %133 = vector.load %arg4[%c13_77, %c0_78] : memref<16x128xf32, #tpu.memory_space<vmem>>, vector<1x128xf32>
    tpu.vector_store %arg4[%c13_77, %c0_78], %131 {strides = array<i32>} : memref<16x128xf32, #tpu.memory_space<vmem>>, vector<1x128xf32>,
    %c14 = arith.constant 14 : index
    %c0_79 = arith.constant 0 : index
    %134 = vector.load %arg8[%c14, %c0_79] : memref<16x128xf32, #tpu.memory_space<vmem>>, vector<1x128xf32>
    %135 = arith.addf %132, %134 : vector<1x128xf32>
    %136 = arith.mulf %31, %131 : vector<1x128xf32>
    %137 = arith.mulf %33, %135 : vector<1x128xf32>
    %138 = arith.addf %136, %137 : vector<1x128xf32>
    %139 = arith.mulf %29, %135 : vector<1x128xf32>
    %c14_80 = arith.constant 14 : index
    %c0_81 = arith.constant 0 : index
    %140 = vector.load %arg4[%c14_80, %c0_81] : memref<16x128xf32, #tpu.memory_space<vmem>>, vector<1x128xf32>
    tpu.vector_store %arg4[%c14_80, %c0_81], %138 {strides = array<i32>} : memref<16x128xf32, #tpu.memory_space<vmem>>, vector<1x128xf32>,
    %c15 = arith.constant 15 : index
    %c0_82 = arith.constant 0 : index
    %141 = vector.load %arg8[%c15, %c0_82] : memref<16x128xf32, #tpu.memory_space<vmem>>, vector<1x128xf32>
    %142 = arith.addf %139, %141 : vector<1x128xf32>
    %143 = arith.mulf %31, %138 : vector<1x128xf32>
    %144 = arith.mulf %33, %142 : vector<1x128xf32>
    %145 = arith.addf %143, %144 : vector<1x128xf32>
    %146 = arith.mulf %29, %142 : vector<1x128xf32>
    %c15_83 = arith.constant 15 : index
    %c0_84 = arith.constant 0 : index
    %147 = vector.load %arg4[%c15_83, %c0_84] : memref<16x128xf32, #tpu.memory_space<vmem>>, vector<1x128xf32>
    tpu.vector_store %arg4[%c15_83, %c0_84], %145 {strides = array<i32>} : memref<16x128xf32, #tpu.memory_space<vmem>>, vector<1x128xf32>,
    %c0_85 = arith.constant 0 : index
    %c0_86 = arith.constant 0 : index
    %148 = vector.load %arg5[%c0_85, %c0_86] : memref<1x128xf32, #tpu.memory_space<vmem>>, vector<1x128xf32>
    tpu.vector_store %arg5[%c0_85, %c0_86], %145 {strides = array<i32>} : memref<1x128xf32, #tpu.memory_space<vmem>>, vector<1x128xf32>,
    %c0_87 = arith.constant 0 : index
    %c0_88 = arith.constant 0 : index
    %149 = vector.load %arg6[%c0_87, %c0_88] : memref<1x128xf32, #tpu.memory_space<vmem>>, vector<1x128xf32>
    tpu.vector_store %arg6[%c0_87, %c0_88], %146 {strides = array<i32>} : memref<1x128xf32, #tpu.memory_space<vmem>>, vector<1x128xf32>,
    return
  }
  func.func @transform_0(%arg0: i32) -> (i32, i32, i32) {
    %c0_i32 = arith.constant 0 : i32
    %c0_i32_0 = arith.constant 0 : i32
    %c0_i32_1 = arith.constant 0 : i32
    return %c0_i32, %arg0, %c0_i32_0 : i32, i32, i32
  }
  func.func @transform_1(%arg0: i32) -> (i32, i32) {
    %c0_i32 = arith.constant 0 : i32
    %c0_i32_0 = arith.constant 0 : i32
    %c0_i32_1 = arith.constant 0 : i32
    return %c0_i32, %c0_i32_0 : i32, i32
  }
  func.func @transform_2(%arg0: i32) -> i32 {
    %c0_i32 = arith.constant 0 : i32
    %c0_i32_0 = arith.constant 0 : i32
    return %c0_i32 : i32
  }
  func.func @transform_3(%arg0: i32) -> (i32, i32) {
    %c0_i32 = arith.constant 0 : i32
    %c0_i32_0 = arith.constant 0 : i32
    return %arg0, %c0_i32 : i32, i32
  }
  func.func @transform_4(%arg0: i32) -> (i32, i32) {
    %c0_i32 = arith.constant 0 : i32
    %c0_i32_0 = arith.constant 0 : i32
    %c0_i32_1 = arith.constant 0 : i32
    return %c0_i32, %c0_i32_0 : i32, i32
  }
  func.func @transform_5(%arg0: i32) -> (i32, i32) {
    %c0_i32 = arith.constant 0 : i32
    %c0_i32_0 = arith.constant 0 : i32
    %c0_i32_1 = arith.constant 0 : i32
    return %c0_i32, %c0_i32_0 : i32, i32
  }
}

</mosaic_0001>

<bundles_post_ra>
// kernel: snn_decode.1
= control target key start
LH: loop header
LB: loop body
LE: loop exit
PB: predicated region body
PF: predicated region fallthrough
CT: control target
= control target key end

     0   :  { %11 = vsyncpa [#allocation5], 0  ;;  %s1410_s0 = inlined_call_operand.hbm [shape: f32[8,64,64], index: 0, kind: input, shape index: {}]   ;;  %s1411_s1 = inlined_call_operand.vmem [shape: f32[64,16], index: 1, kind: input, shape index: {}]   ;;  %s1412_s2 = inlined_call_operand.vmem [shape: f32[3], index: 2, kind: input, shape index: {}]   ;;  %s1413_s3 = inlined_call_operand.vmem [shape: f32[64,128], index: 3, kind: output, shape index: {0}]   ;;  %s1414_s4 = inlined_call_operand.vmem [shape: f32[1,128], index: 4, kind: output, shape index: {1}]   ;;  %s1415_s5 = inlined_call_operand.vmem [shape: f32[1,128], index: 5, kind: output, shape index: {2}]  }
   0x1   :  { %13 = vsyncpa [#allocation5 + $0x1], 0 }
   0x2   :  { %14 = vsyncpa [#allocation6], 0  ;;  %s1119_s18 = smov 0   ;;  %s1121_s19 = smov 0  }
   0x3   :  { %s1123_s20 = smov 0   ;;  %s1125_s21 = smov 0  }
   0x4 LB: > { %s1138_s22 = sadd.s32 4294967295, %s1072_s21   ;;  %s1141_s23 = sadd.s32 1, %s1072_s21   ;;  %s1072_s21 = sphi %s1125_s21, %s1425_s21   ;;  %s1068_s20 = sphi %s1123_s20, %s1424_s20   ;;  %s1064_s19 = sphi %s1121_s19, %s1423_s19   ;;  %s1060_s18 = sphi %s1119_s18, %s1422_s18  }
   0x5   : > { %s24_s24 = ssub.s32 %s1072_s21, %s1141_s23  ;;  %s27_s25 = sadd.s32 1, %s1068_s20 }
   0x6   : > { %p25_p0 = scmp.eq.s32.totalorder %s24_s24, 0  ;;  %p34_p1 = scmp.ne.s32.totalorder %s1068_s20, %s1064_s19 }
   0x7   : > { %p35_p2 = scmp.eq.s32.totalorder %s1072_s21, 0  ;;  %p40_p3 = scmp.ne.s32.totalorder %s1064_s19, %s1060_s18 }
   0x8   : > { %s1151_s26 = scalar_select %p25_p0, %s1068_s20, %s27_s25  }
   0x9   : > { %p1153_p4 = por %p35_p2, %p34_p1  ;;  %p41_p5 = scmp.eq.s32.totalorder %s1138_s22, 0 }
   0xa   : > { %p830_p6 = scmp.ge.s32.totalorder %s1072_s21, 1  ;;  %p161_p7 = scmp.lt.s32.totalorder %s1072_s21, 5 }
   0xb   : > { %p1162_p8 = por %p41_p5, %p40_p3  ;;  %s177_s7 = sshll.u32 %s1412_s2, 4  ;;  %s178_s7 = int_to_ptr.vmem [resolvable:$true] %s177_s7 }
   0xc   : > { %p1167_p10 = pnand %p830_p6, %p161_p7  ;;  %s1019_s8 = scalar_lea.vmem %s178_s7, 16 }
   0xd   : > { %s1418_s28 = scalar_select %p1162_p8, 1, 0 }
   0xe   : > { %p966_p11 = pneg %p1167_p10  ;;  %p1020_p13 = scmp.ne.s32.totalorder %s178_s7, %s1019_s8 }
   0xf   : > { %p1027_p3 = scmp.lt.s32.totalorder %s178_s7, %s178_s7  ;;  %p1028_p6 = scmp.lt.s32.totalorder %s1019_s8, %s1019_s8 }
  0x10   : > { %p967_p12 = pnand %p966_p11, %p41_p5 }
  0x11   : > { %p1029_p7 = por %p1028_p6, %p1027_p3 }
  0x12   : > { %p1021_p0 = pneg %p967_p12 }
  0x14   : > { %p1022_p1 = pnand %p1021_p0, %p1020_p13 }
  0x16   : > { %p1023_p2 = pneg %p1022_p1 }
  0x18   : > { %p1030_p9 = pnand %p1029_p7, %p1023_p2 }
  0x1a   : > { %1033 = shalt.err (!%p1030_p9)
}
  0x1b   : > { %s1074_s9 = smov [#allocation7]   ;;  %p832_p8 = scmp.ge.s32.totalorder %s1072_s21, 4 }
  0x1c   : > { %969 = dma.vmem_to_smem (!%p967_p12), %s178_s7, 16, %s1074_s9, [#allocation6]  }
  0x1d   : > { %184 = sbr.rel (%p832_p8) target bundleno = 49 (0x31), region = 24 }
  0x24   : > { %s188_s10 = sand.u32 1, %s1068_s20   ;;  %s864_s11 = sshll.u32 %s1072_s21, 8 }
  0x25   : > { %s833_s12 = sshll.u32 %s188_s10, 7  ;;  %s198_s15 = scalar_lea.hbm %s1410_s0, %s864_s11 }
  0x26   : > { %s955_s16 = scalar_select %p1153_p4, [#allocation0], [#allocation10] }
  0x27   : > { %s192_s17 = scalar_lea.vmem [#allocation4], %s833_s12  ;;  %s1075_s25 = smov 1024  }
  0x28   : > { %s211_s18 = sshll.u32 %s192_s17, 4  ;;  %s203_s24 = sld [smem:[%s955_s16]]   ;;  %s212_s18 = int_to_ptr.vmem [resolvable:$true] %s211_s18 }
  0x29   : > { %956 = sst [smem:[#allocation9]] (%p1153_p4), %s1075_s25  ;;  %s1076_s30 = smov 256  }
  0x2a   : > { %957 = sst [smem:[#allocation9 + $0x1]] (%p1153_p4), %s1076_s30  ;;  %s1077_s21 = smov 2  }
  0x2b   : > { %958 = sst [smem:[#allocation9 + $0x2]] (%p1153_p4), %s1077_s21  ;;  %s1078_s6 = smov 128  }
  0x2c   : > { %959 = sst [smem:[#allocation9 + $0x3]] (%p1153_p4), %s1078_s6  ;;  %s1079_s8 = smov 8  }
  0x2d   : > { %960 = sst [smem:[#allocation9 + $0x4]] (%p1153_p4), %s1078_s6  ;;  %s189_s11 = scalar_lea.sflag [#allocation5], %s188_s10 }
  0x2e   : > { %s836_s7 = sshll.u32 %s203_s24, 26  ;;  %961 = sst [smem:[#allocation9 + $0x5]] (%p1153_p4), %s1079_s8 }
  0x2f   : > { %s837_s9 = sadd.s32 134217728, %s836_s7  ;;  %s1080_s12 = smov [#allocation8]  }
  0x30   : > { %962 = dma.general (%p1153_p4), %s198_s15, 2048, %s212_s18, %s189_s11, %s1080_s12, [#allocation9], %s837_s9, 0  }
  0x31 PF: > { %236 = sbr.rel (%p1167_p10) target bundleno = 518 (0x206), region = 32  ;;  %s238_s13 = sand.u32 (!%p1167_p10), 1, %s1064_s19  }
  0x32   : > { %s839_s14 = sshll.u32 (!%p1167_p10), %s238_s13, 7  ;;  %s239_s16 = scalar_lea.sflag (!%p1167_p10), [#allocation5], %s238_s13 }
  0x33   : > { %s1203_s17 = scalar_lea.vmem (!%p1167_p10), [#allocation4], %s839_s14  ;;  %p1420_p8 = scmp.ne.s32.totalorder (!%p1167_p10), %s1418_s28, 0 }
  0x38   : > { %1051 = dma.done.wait (%p1420_p8), %s239_s16, 2048  }
  0x39   : > { %1053 = vsyncadd (%p1420_p8), %s239_s16, 4294965248 }
  0x3a   : > { %1055 = dma.done.wait (%p41_p5), [#allocation6], 16  }
  0x3b   : > { %1057 = vsyncadd (%p41_p5), [#allocation6], 4294967280 }
  0x3c   : > { %251 = sfence }
  0x3d   : > { %s841_s27 = sshll.u32 %s1138_s22, 1  ;;  %p1421_p9 = scmp.ne.s32.totalorder %s1138_s22, 0 }
  0x3e   : > { %p276_p4 = scmp.lt.s32.totalorder %s841_s27, 7  ;;  %v1081_v0 = vmov (!%p1421_p9), 0.0  }
  0x3f   : > { %284 = sbr.rel (%p1421_p9) target bundleno = 70 (0x46), region = 44  ;;  %285 = vst [vmem:[%s1414_s4] sm:$0x1] (!%p1421_p9), %v1081_v0  ;;  %286 = vst [vmem:[%s1415_s5] sm:$0x1] (!%p1421_p9), %v1081_v0 }
  0x40   : > { %s1427_s27 = smov (!%p276_p4, %s841_s27), 7 }
  0x41   : > { %s842_s29 = sshll.u32 %s1427_s27, 3 }
  0x42   : > { %s1217_s18 = scalar_lea.vmem %s1413_s3, %s842_s29 }
  0x46 PF: > { %v303_v1 = vld [vmem:[%s1411_s1] sm:$0xff]  ;;  %v304_v2 = vld [vmem:[%s1411_s1 + $0x8] sm:$0xff]  ;;  %v305_v3 = vld [vmem:[%s1411_s1 + $0x10] sm:$0xff]  ;;  %vm311_vm0 = vcmask 523264   ;;  %vm505_vm1 = vcmask 130048   ;;  %s1083_s24 = smov 16  }
  0x47   : > { %v929_v4 = vpack.c.bf16 %v304_v2, %v303_v1  ;;  %v306_v5 = vld [vmem:[%s1411_s1 + $0x18] sm:$0xff]  ;;  %v307_v7 = vld [vmem:[%s1411_s1 + $0x20] sm:$0xff]  ;;  %v308_v8 = vld [vmem:[%s1411_s1 + $0x28] sm:$0xff]  ;;  %s1084_s25 = smov 32   ;;  %s1085_s30 = smov 80   ;;  %vm559_vm2 = vcmask 261120  }
  0x48   : > { %v933_v6 = vpack.c.bf16 %v306_v5, %v305_v3  ;;  %v287_v9 = vld [vmem:[%s1203_s17] sm:$0xff]  ;;  %v937_v11 = vpack.c.bf16 %v308_v8, %v307_v7  ;;  %v310_v13 = vld [vmem:[%s1411_s1 + $0x38] sm:$0xff]  ;;  %v289_v17 = vld [vmem:[%s1203_s17 + $0x10] sm:$0xff]  ;;  %s1086_s21 = smov 48   ;;  %s1087_s6 = smov 112   ;;  %vm561_vm3 = vcmask 392192  }
  0x49   : > { %930 = vmatprep.subr.bf16.mxu0 %v929_v4  ;;  %945 = vmatprep.subr.bf16.mxu1 %v929_v4  ;;  %v295_v10 = vld [vmem:[%s1203_s17 + $0x40] sm:$0xff]  ;;  %v288_v15 = vld [vmem:[%s1203_s17 + $0x8] sm:$0xff]  ;;  %v297_v18 = vld [vmem:[%s1203_s17 + $0x50] sm:$0xff]  ;;  %s1088_s7 = smov 96   ;;  %vm564_vm4 = vcmask 654336   ;;  %vm566_vm5 = vcmask 785408  }
  0x4a   : > { %932 = vmatpush3.bf16.msra.mxu0 %v929_v4  ;;  %949 = vmatpush3.bf16.msra.mxu1 %v929_v4  ;;  %v309_v12 = vld [vmem:[%s1411_s1 + $0x30] sm:$0xff]  ;;  %v296_v16 = vld [vmem:[%s1203_s17 + $0x48] sm:$0xff]  ;;  %v290_v19 = vld [vmem:[%s1203_s17 + $0x18] sm:$0xff]  ;;  %vm568_vm6 = vcmask 916480   ;;  %s860_s8 = sld [smem:[#allocation7 + $0x1]]  ;;  %s615_s22 = sld [smem:[#allocation7]] }
  0x4b   : > { %934 = vmatprep.subr.bf16.mxu0 %v933_v6  ;;  %946 = vmatprep.subr.bf16.mxu1 %v933_v6  ;;  %v941_v14 = vpack.c.bf16 %v310_v13, %v309_v12  ;;  %v298_v20 = vld [vmem:[%s1203_s17 + $0x58] sm:$0xff]  ;;  %v291_v21 = vld [vmem:[%s1203_s17 + $0x20] sm:$0xff]  ;;  %v292_v23 = vld [vmem:[%s1203_s17 + $0x28] sm:$0xff]  ;;  %s861_s9 = sld [smem:[#allocation7 + $0x2]] }
  0x4c   : > { %905 = vmatprep.mubr.msk.f32.mxu0 %vm311_vm0, %v287_v9  ;;  %917 = vmatprep.mubr.msk.f32.mxu1 %vm311_vm0, %v295_v10  ;;  %v299_v22 = vld [vmem:[%s1203_s17 + $0x60] sm:$0xff]  ;;  %v300_v24 = vld [vmem:[%s1203_s17 + $0x68] sm:$0xff]  ;;  %v293_v25 = vld [vmem:[%s1203_s17 + $0x30] sm:$0xff] }
  0x4d   : > { %v301_v26 = vld [vmem:[%s1203_s17 + $0x70] sm:$0xff]  ;;  %v294_v27 = vld [vmem:[%s1203_s17 + $0x38] sm:$0xff] }
  0x4e   : > { %936 = vmatpush3.bf16.msra.mxu0 %v933_v6  ;;  %950 = vmatpush3.bf16.msra.mxu1 %v933_v6  ;;  %v302_v28 = vld [vmem:[%s1203_s17 + $0x78] sm:$0xff]  ;;  %s1082_s17 = smov 64  }
  0x4f   : > { %938 = vmatprep.subr.bf16.mxu0 %v937_v11  ;;  %947 = vmatprep.subr.bf16.mxu1 %v937_v11 }
  0x52   : > { %940 = vmatpush3.bf16.msra.mxu0 %v937_v11  ;;  %951 = vmatpush3.bf16.msra.mxu1 %v937_v11 }
  0x53   : > { %942 = vmatprep.subr.bf16.mxu0 %v941_v14  ;;  %948 = vmatprep.subr.bf16.mxu1 %v941_v14 }
  0x56   : > { %944 = vmatpush3.bf16.msra.mxu0 %v941_v14  ;;  %952 = vmatpush3.bf16.msra.mxu1 %v941_v14  ;;  %v1309_v14 = vstv %s860_s8 }
  0x59   : > { %906 = vmatmul.mubr.msk.f32.vlgmr.msra.gmra.mrb[0].mxu0 %vm311_vm0, %v288_v15  ;;  %918 = vmatmul.mubr.msk.f32.vlgmr.msra.gmra.mrb[0].mxu1 %vm311_vm0, %v296_v16  ;;  %v621_v15 = vld [vmem:[%s1414_s4] sm:$0x1] }
  0x5a   : > { %908 = vmatprep.mubr.msk.f32.mxu0 %vm311_vm0, %v289_v17  ;;  %920 = vmatprep.mubr.msk.f32.mxu1 %vm311_vm0, %v297_v18  ;;  %v622_v16 = vld [vmem:[%s1415_s5] sm:$0x1] }
  0x5d   : > { %909 = vmatmul.mubr.msk.f32.gmra.mrb[2].mxu0 %vm311_vm0, %v290_v19  ;;  %921 = vmatmul.mubr.msk.f32.gmra.mrb[2].mxu1 %vm311_vm0, %v298_v20 }
  0x5e   : > { %911 = vmatprep.mubr.msk.f32.mxu0 %vm311_vm0, %v291_v21  ;;  %923 = vmatprep.mubr.msk.f32.mxu1 %vm311_vm0, %v299_v22  ;;  %v1319_v21 = vstv %s615_s22  ;;  %v1321_v22 = vstv %s861_s9 }
  0x61   : > { %912 = vmatmul.mubr.msk.f32.gmra.mrb[4].mxu0 %vm311_vm0, %v292_v23  ;;  %924 = vmatmul.mubr.msk.f32.gmra.mrb[4].mxu1 %vm311_vm0, %v300_v24  ;;  %v625_v24 = vmul.f32 %v621_v15, %v1309_v14 }
  0x62   : > { %914 = vmatprep.mubr.msk.f32.mxu0 %vm311_vm0, %v293_v25  ;;  %926 = vmatprep.mubr.msk.f32.mxu1 %vm311_vm0, %v301_v26 }
  0x65   : > { %915 = vmatmul.mubr.msk.f32.gmra.mrb[6].mxu0 %vm311_vm0, %v294_v27  ;;  %927 = vmatmul.mubr.msk.f32.gmra.mrb[6].mxu1 %vm311_vm0, %v302_v28 }
 0x12c   : > { %v907_v29 = vpop.f32.mrb[0].mxu0  ;;  %v919_v30 = vpop.f32.mrb[0].mxu1 }
 0x12d   : > { %507 = vst.msk [vmem:[#allocation2 + $0x8] sm:$0xff] %vm505_vm1, %v907_v29  ;;  %v426_v31 = vpop.f32.mrb[1].mxu0  ;;  %515 = vst.msk [vmem:[#allocation2 + $0x48] sm:$0xff] %vm505_vm1, %v919_v30  ;;  %v466_v32 = vpop.f32.mrb[1].mxu1 }
 0x12e   : > { %506 = vst.msk [vmem:[#allocation2] sm:$0xff] %vm505_vm1, %v426_v31  ;;  %514 = vst.msk [vmem:[#allocation2 + $0x40] sm:$0xff] %vm505_vm1, %v466_v32 }
 0x130   : > { %v910_v33 = vpop.f32.mrb[2].mxu0  ;;  %v922_v34 = vpop.f32.mrb[2].mxu1 }
 0x131   : > { %509 = vst.msk [vmem:[#allocation2 + $0x18] sm:$0xff] %vm505_vm1, %v910_v33  ;;  %v436_v35 = vpop.f32.mrb[3].mxu0  ;;  %517 = vst.msk [vmem:[#allocation2 + $0x58] sm:$0xff] %vm505_vm1, %v922_v34  ;;  %v476_v36 = vpop.f32.mrb[3].mxu1 }
 0x132   : > { %508 = vst.msk [vmem:[#allocation2 + $0x10] sm:$0xff] %vm505_vm1, %v436_v35  ;;  %516 = vst.msk [vmem:[#allocation2 + $0x50] sm:$0xff] %vm505_vm1, %v476_v36 }
 0x134   : > { %v913_v37 = vpop.f32.mrb[4].mxu0  ;;  %v925_v38 = vpop.f32.mrb[4].mxu1  ;;  %v575_v54 = vld [vmem:[#allocation2 + $0x48] sm:$0xff] }
 0x135   : > { %511 = vst.msk [vmem:[#allocation2 + $0x28] sm:$0xff] %vm505_vm1, %v913_v37  ;;  %v446_v39 = vpop.f32.mrb[5].mxu0  ;;  %519 = vst.msk [vmem:[#allocation2 + $0x68] sm:$0xff] %vm505_vm1, %v925_v38  ;;  %v486_v40 = vpop.f32.mrb[5].mxu1  ;;  %v526_v41 = vld [vmem:[#allocation2 + $0x40] sm:$0xff]  ;;  %v571_v11 = vld [vmem:[#allocation2 + $0x8] sm:$0xff] }
 0x136   : > { %510 = vst.msk [vmem:[#allocation2 + $0x20] sm:$0xff] %vm505_vm1, %v446_v39  ;;  %518 = vst.msk [vmem:[#allocation2 + $0x60] sm:$0xff] %vm505_vm1, %v486_v40  ;;  %543 = vrot.lane.b32.xlu1 %v526_v41, %s1082_s17  ;;  %v522_v62 = vld [vmem:[#allocation2] sm:$0xff] }
 0x138   : > { %v916_v42 = vpop.f32.mrb[6].mxu0  ;;  %v928_v43 = vpop.f32.mrb[6].mxu1  ;;  %v572_v53 = vld [vmem:[#allocation2 + $0x18] sm:$0xff] }
 0x139   : > { %513 = vst.msk [vmem:[#allocation2 + $0x38] sm:$0xff] %vm505_vm1, %v916_v42  ;;  %v456_v44 = vpop.f32.mrb[7].mxu0  ;;  %v523_v45 = vld [vmem:[#allocation2 + $0x10] sm:$0xff]  ;;  %521 = vst.msk [vmem:[#allocation2 + $0x78] sm:$0xff] %vm505_vm1, %v928_v43  ;;  %v496_v46 = vpop.f32.mrb[7].mxu1  ;;  %v576_v57 = vld [vmem:[#allocation2 + $0x58] sm:$0xff] }
 0x13a   : > { %512 = vst.msk [vmem:[#allocation2 + $0x30] sm:$0xff] %vm505_vm1, %v456_v44  ;;  %531 = vrot.lane.b32.xlu0 %v523_v45, %s1083_s24  ;;  %520 = vst.msk [vmem:[#allocation2 + $0x70] sm:$0xff] %vm505_vm1, %v496_v46  ;;  %v527_v48 = vld [vmem:[#allocation2 + $0x50] sm:$0xff] }
 0x13c   : > { %v573_v52 = vld [vmem:[#allocation2 + $0x28] sm:$0xff] }
 0x13d   : > { %v524_v47 = vld [vmem:[#allocation2 + $0x20] sm:$0xff]  ;;  %v577_v56 = vld [vmem:[#allocation2 + $0x68] sm:$0xff] }
 0x13e   : > { %535 = vrot.lane.b32.xlu0 %v524_v47, %s1084_s25  ;;  %v528_v51 = vld [vmem:[#allocation2 + $0x60] sm:$0xff] }
 0x140   : > { %v574_v55 = vld [vmem:[#allocation2 + $0x38] sm:$0xff] }
 0x141   : > { %v525_v49 = vld [vmem:[#allocation2 + $0x30] sm:$0xff]  ;;  %v578_v58 = vld [vmem:[#allocation2 + $0x78] sm:$0xff] }
 0x142   : > { %547 = vrot.lane.b32.xlu0 %v527_v48, %s1085_s30  ;;  %539 = vrot.lane.b32.xlu1 %v525_v49, %s1086_s21  ;;  %v529_v50 = vld [vmem:[#allocation2 + $0x70] sm:$0xff] }
 0x146   : > { %555 = vrot.lane.b32.xlu0 %v529_v50, %s1087_s6  ;;  %551 = vrot.lane.b32.xlu1 %v528_v51, %s1088_s7 }
 0x14a   : > { %584 = vrot.lane.b32.xlu0 %v573_v52, %s1084_s25  ;;  %580 = vrot.lane.b32.xlu1 %v572_v53, %s1083_s24 }
 0x14e   : > { %592 = vrot.lane.b32.xlu0 %v575_v54, %s1082_s17  ;;  %588 = vrot.lane.b32.xlu1 %v574_v55, %s1086_s21 }
 0x152   : > { %600 = vrot.lane.b32.xlu0 %v577_v56, %s1088_s7  ;;  %596 = vrot.lane.b32.xlu1 %v576_v57, %s1085_s30 }
 0x156   : > { %604 = vrot.lane.b32.xlu1 %v578_v58, %s1087_s6 }
 0x1a8   : > { %v544_v60 = vpop.permute.xlu1 %543 }
 0x1ac   : > { %v532_v59 = vpop.permute.xlu0 %531 }
 0x1ad   : > { %v558_v63 = vsel %vm505_vm1, %v522_v62, %v532_v59 }
 0x1b0   : > { %v536_v61 = vpop.permute.xlu0 %535 }
 0x1b1   : > { %v560_v0 = vsel %vm559_vm2, %v558_v63, %v536_v61 }
 0x1b4   : > { %v548_v1 = vpop.permute.xlu0 %547  ;;  %v540_v2 = vpop.permute.xlu1 %539 }
 0x1b5   : > { %v562_v3 = vsel %vm561_vm3, %v560_v0, %v540_v2 }
 0x1b6   : > { %v563_v4 = vsel %vm311_vm0, %v562_v3, %v544_v60 }
 0x1b7   : > { %v565_v5 = vsel %vm564_vm4, %v563_v4, %v548_v1 }
 0x1b8   : > { %v556_v6 = vpop.permute.xlu0 %555  ;;  %v552_v7 = vpop.permute.xlu1 %551 }
 0x1b9   : > { %v567_v8 = vsel %vm566_vm5, %v565_v5, %v552_v7 }
 0x1ba   : > { %v569_v9 = vsel %vm568_vm6, %v567_v8, %v556_v6 }
 0x1bb   : > { %570 = vst [vmem:[#allocation3] sm:$0xff] %v569_v9 }
 0x1bc   : > { %v585_v10 = vpop.permute.xlu0 %584  ;;  %v581_v12 = vpop.permute.xlu1 %580 }
 0x1bd   : > { %v607_v13 = vsel %vm505_vm1, %v571_v11, %v581_v12 }
 0x1be   : > { %v608_v18 = vsel %vm559_vm2, %v607_v13, %v585_v10 }
 0x1c0   : > { %v593_v17 = vpop.permute.xlu0 %592  ;;  %v589_v19 = vpop.permute.xlu1 %588 }
 0x1c1   : > { %v609_v20 = vsel %vm561_vm3, %v608_v18, %v589_v19 }
 0x1c2   : > { %v623_v23 = vld [vmem:[#allocation3] sm:$0x1]  ;;  %v610_v26 = vsel %vm311_vm0, %v609_v20, %v593_v17  ;;  %v630_v32 = vld [vmem:[#allocation3 + $0x1] sm:$0x1]  ;;  %v637_v41 = vld [vmem:[#allocation3 + $0x2] sm:$0x1] }
 0x1c3   : > { %v624_v25 = vadd.f32 %v623_v23, %v622_v16  ;;  %v644_v47 = vld [vmem:[#allocation3 + $0x3] sm:$0x1]  ;;  %v651_v53 = vld [vmem:[#allocation3 + $0x4] sm:$0x1]  ;;  %v658_v59 = vld [vmem:[#allocation3 + $0x5] sm:$0x1] }
 0x1c4   : > { %v597_v27 = vpop.permute.xlu1 %596  ;;  %v601_v30 = vpop.permute.xlu0 %600  ;;  %v665_v1 = vld [vmem:[#allocation3 + $0x6] sm:$0x1]  ;;  %v672_v7 = vld [vmem:[#allocation3 + $0x7] sm:$0x1] }
 0x1c5   : > { %v626_v28 = vmul.f32 %v624_v25, %v1321_v22  ;;  %v628_v29 = vmul.f32 %v624_v25, %v1319_v21  ;;  %v611_v31 = vsel %vm564_vm4, %v610_v26, %v597_v27 }
 0x1c6   : > { %v612_v35 = vsel %vm566_vm5, %v611_v31, %v601_v30 }
 0x1c7   : > { %v627_v33 = vadd.f32 %v626_v28, %v625_v24  ;;  %v631_v34 = vadd.f32 %v630_v32, %v628_v29 }
 0x1c8   : > { %v605_v36 = vpop.permute.xlu1 %604 }
 0x1c9   : > { %v632_v37 = vmul.f32 %v627_v33, %v1309_v14  ;;  %v633_v38 = vmul.f32 %v631_v34, %v1321_v22  ;;  %v635_v39 = vmul.f32 %v631_v34, %v1319_v21  ;;  %629 = vst [vmem:[%s1217_s18] sm:$0x1] %v627_v33  ;;  %v613_v40 = vsel %vm568_vm6, %v612_v35, %v605_v36 }
 0x1ca   : > { %614 = vst [vmem:[#allocation3 + $0x8] sm:$0xff] %v613_v40 }
 0x1cb   : > { %v634_v42 = vadd.f32 %v633_v38, %v632_v37  ;;  %v638_v43 = vadd.f32 %v637_v41, %v635_v39 }
 0x1cd   : > { %v639_v44 = vmul.f32 %v634_v42, %v1309_v14  ;;  %v640_v45 = vmul.f32 %v638_v43, %v1321_v22  ;;  %v642_v46 = vmul.f32 %v638_v43, %v1319_v21  ;;  %636 = vst [vmem:[%s1217_s18 + $0x1] sm:$0x1] %v634_v42 }
 0x1cf   : > { %v641_v48 = vadd.f32 %v640_v45, %v639_v44  ;;  %v645_v49 = vadd.f32 %v644_v47, %v642_v46 }
 0x1d1   : > { %v646_v50 = vmul.f32 %v641_v48, %v1309_v14  ;;  %v647_v51 = vmul.f32 %v645_v49, %v1321_v22  ;;  %v649_v52 = vmul.f32 %v645_v49, %v1319_v21  ;;  %643 = vst [vmem:[%s1217_s18 + $0x2] sm:$0x1] %v641_v48  ;;  %v679_v13 = vld [vmem:[#allocation3 + $0x8] sm:$0x1]  ;;  %v686_v20 = vld [vmem:[#allocation3 + $0x9] sm:$0x1] }
 0x1d2   : > { %v693_v28 = vld [vmem:[#allocation3 + $0xa] sm:$0x1]  ;;  %v700_v34 = vld [vmem:[#allocation3 + $0xb] sm:$0x1]  ;;  %v707_v40 = vld [vmem:[#allocation3 + $0xc] sm:$0x1] }
 0x1d3   : > { %v648_v54 = vadd.f32 %v647_v51, %v646_v50  ;;  %v652_v55 = vadd.f32 %v651_v53, %v649_v52  ;;  %v714_v46 = vld [vmem:[#allocation3 + $0xd] sm:$0x1]  ;;  %v721_v52 = vld [vmem:[#allocation3 + $0xe] sm:$0x1] }
 0x1d5   : > { %v653_v56 = vmul.f32 %v648_v54, %v1309_v14  ;;  %v654_v57 = vmul.f32 %v652_v55, %v1321_v22  ;;  %v656_v58 = vmul.f32 %v652_v55, %v1319_v21  ;;  %650 = vst [vmem:[%s1217_s18 + $0x3] sm:$0x1] %v648_v54 }
 0x1d7   : > { %v655_v60 = vadd.f32 %v654_v57, %v653_v56  ;;  %v659_v61 = vadd.f32 %v658_v59, %v656_v58  ;;  %v728_v58 = vld [vmem:[#allocation3 + $0xf] sm:$0x1] }
 0x1d9   : > { %v660_v62 = vmul.f32 %v655_v60, %v1309_v14  ;;  %v661_v63 = vmul.f32 %v659_v61, %v1321_v22  ;;  %v663_v0 = vmul.f32 %v659_v61, %v1319_v21  ;;  %657 = vst [vmem:[%s1217_s18 + $0x4] sm:$0x1] %v655_v60 }
 0x1db   : > { %v662_v2 = vadd.f32 %v661_v63, %v660_v62  ;;  %v666_v3 = vadd.f32 %v665_v1, %v663_v0 }
 0x1dd   : > { %v667_v4 = vmul.f32 %v662_v2, %v1309_v14  ;;  %v668_v5 = vmul.f32 %v666_v3, %v1321_v22  ;;  %v670_v6 = vmul.f32 %v666_v3, %v1319_v21  ;;  %664 = vst [vmem:[%s1217_s18 + $0x5] sm:$0x1] %v662_v2 }
 0x1df   : > { %v669_v8 = vadd.f32 %v668_v5, %v667_v4  ;;  %v673_v9 = vadd.f32 %v672_v7, %v670_v6 }
 0x1e1   : > { %v674_v10 = vmul.f32 %v669_v8, %v1309_v14  ;;  %v675_v11 = vmul.f32 %v673_v9, %v1321_v22  ;;  %671 = vst [vmem:[%s1217_s18 + $0x6] sm:$0x1] %v669_v8  ;;  %v677_v12 = vmul.f32 %v673_v9, %v1319_v21 }
 0x1e3   : > { %v676_v15 = vadd.f32 %v675_v11, %v674_v10  ;;  %v680_v16 = vadd.f32 %v679_v13, %v677_v12 }
 0x1e5   : > { %678 = vst [vmem:[%s1217_s18 + $0x7] sm:$0x1] %v676_v15  ;;  %v681_v17 = vmul.f32 %v676_v15, %v1309_v14  ;;  %v682_v18 = vmul.f32 %v680_v16, %v1321_v22  ;;  %v684_v19 = vmul.f32 %v680_v16, %v1319_v21 }
 0x1e7   : > { %v683_v23 = vadd.f32 %v682_v18, %v681_v17  ;;  %v687_v24 = vadd.f32 %v686_v20, %v684_v19 }
 0x1e9   : > { %685 = vst [vmem:[%s1217_s18 + $0x8] sm:$0x1] %v683_v23  ;;  %v688_v25 = vmul.f32 %v683_v23, %v1309_v14  ;;  %v689_v26 = vmul.f32 %v687_v24, %v1321_v22  ;;  %v691_v27 = vmul.f32 %v687_v24, %v1319_v21 }
 0x1eb   : > { %v690_v29 = vadd.f32 %v689_v26, %v688_v25  ;;  %v694_v30 = vadd.f32 %v693_v28, %v691_v27 }
 0x1ed   : > { %692 = vst [vmem:[%s1217_s18 + $0x9] sm:$0x1] %v690_v29  ;;  %v695_v31 = vmul.f32 %v690_v29, %v1309_v14  ;;  %v696_v32 = vmul.f32 %v694_v30, %v1321_v22  ;;  %v698_v33 = vmul.f32 %v694_v30, %v1319_v21 }
 0x1ef   : > { %v697_v35 = vadd.f32 %v696_v32, %v695_v31  ;;  %v701_v36 = vadd.f32 %v700_v34, %v698_v33 }
 0x1f1   : > { %699 = vst [vmem:[%s1217_s18 + $0xa] sm:$0x1] %v697_v35  ;;  %v702_v37 = vmul.f32 %v697_v35, %v1309_v14  ;;  %v703_v38 = vmul.f32 %v701_v36, %v1321_v22  ;;  %v705_v39 = vmul.f32 %v701_v36, %v1319_v21 }
 0x1f3   : > { %v704_v41 = vadd.f32 %v703_v38, %v702_v37  ;;  %v708_v42 = vadd.f32 %v707_v40, %v705_v39 }
 0x1f5   : > { %706 = vst [vmem:[%s1217_s18 + $0xb] sm:$0x1] %v704_v41  ;;  %v709_v43 = vmul.f32 %v704_v41, %v1309_v14  ;;  %v710_v44 = vmul.f32 %v708_v42, %v1321_v22  ;;  %v712_v45 = vmul.f32 %v708_v42, %v1319_v21 }
 0x1f7   : > { %v711_v47 = vadd.f32 %v710_v44, %v709_v43  ;;  %v715_v48 = vadd.f32 %v714_v46, %v712_v45 }
 0x1f9   : > { %713 = vst [vmem:[%s1217_s18 + $0xc] sm:$0x1] %v711_v47  ;;  %v716_v49 = vmul.f32 %v711_v47, %v1309_v14  ;;  %v717_v50 = vmul.f32 %v715_v48, %v1321_v22  ;;  %v719_v51 = vmul.f32 %v715_v48, %v1319_v21 }
 0x1fb   : > { %v718_v53 = vadd.f32 %v717_v50, %v716_v49  ;;  %v722_v54 = vadd.f32 %v721_v52, %v719_v51 }
 0x1fd   : > { %720 = vst [vmem:[%s1217_s18 + $0xd] sm:$0x1] %v718_v53  ;;  %v723_v55 = vmul.f32 %v718_v53, %v1309_v14  ;;  %v724_v56 = vmul.f32 %v722_v54, %v1321_v22  ;;  %v726_v57 = vmul.f32 %v722_v54, %v1319_v21 }
 0x1ff   : > { %v725_v59 = vadd.f32 %v724_v56, %v723_v55  ;;  %v729_v60 = vadd.f32 %v728_v58, %v726_v57 }
 0x201   : > { %727 = vst [vmem:[%s1217_s18 + $0xe] sm:$0x1] %v725_v59  ;;  %v730_v61 = vmul.f32 %v725_v59, %v1309_v14  ;;  %v731_v62 = vmul.f32 %v729_v60, %v1321_v22  ;;  %v733_v63 = vmul.f32 %v729_v60, %v1319_v21 }
 0x203   : > { %v732_v0 = vadd.f32 %v731_v62, %v730_v61  ;;  %736 = vst [vmem:[%s1415_s5] sm:$0x1] %v733_v63 }
 0x205   : > { %734 = vst [vmem:[%s1217_s18 + $0xf] sm:$0x1] %v732_v0  ;;  %735 = vst [vmem:[%s1414_s4] sm:$0x1] %v732_v0 }
 0x206 PF: > { %p17_p5 = scmp.ge.s32.totalorder %s1141_s23, 6   ;;  %s1422_s18 = smov %s1064_s19 }
 0x207   : > { %s1423_s19 = smov %s1068_s20  ;;  %s1424_s20 = smov %s1151_s26 }
 0x208   : > { %s1425_s21 = smov %s1141_s23  ;;  %19 = sbr.rel (!%p17_p5) target bundleno = 4 (0x4), region = 102 }
 0x20f   :  { %771 = vsyncpa [#allocation5], 1 }
 0x210   :  { %773 = vsyncpa [#allocation5 + $0x1], 1 }
 0x211   :  { %774 = vsyncpa [#allocation6], 1 }
 0x212   :  { %776 = vsyncpa [#allocation6 + $0x1], 1 }

</bundles_post_ra>
